<compile_context>
chip_gen: v7x
topology: tpu7x:2x2x1
jax: 0.10.0
libtpu: 0.0.40
codegen_flags: <defaults>
</compile_context>

<pallas_src>
from functools import partial

import numpy as np

import jax
import jax.numpy as jnp
from jax.experimental import pallas as pl
from jax.experimental.pallas import tpu as pltpu


def _round_up(x, mult):
    return (x + mult - 1) // mult * mult


def _mmd2_kernel(bi_ref, bj_ref, sigma_ref, zr_ref, zc_ref, out_ref, acc_ref,
                 *, m, n, n_sigma, blk):
    """Signed, sigma-mixed block sum of the RBF Gram.

    bi_ref, bj_ref : SMEM (T,) i32  -- upper-triangle block coords (prefetch)
    sigma_ref      : SMEM (n_sigma,) f32 -- RBF bandwidths
    zr_ref         : VMEM (blk, d)  -- row block of padded Z (native dtype)
    zc_ref         : VMEM (blk, d)  -- col block of padded Z (native dtype)
    out_ref        : SMEM (1, 1) f32 -- mmd2 (written at last grid step)
    acc_ref        : SMEM (1,) f32   -- running signed sum
    """
    t = pl.program_id(0)

    @pl.when(t == 0)
    def _():
        acc_ref[0] = jnp.float32(0.0)

    i = bi_ref[t]
    j = bj_ref[t]

    zr = zr_ref[...]                                  # (blk, d)
    zc = zc_ref[...]                                  # (blk, d)

    # ---- Gram block on the MXU (contract feature axis of both operands) ----
    zz = jax.lax.dot_general(
        zr, zc,
        dimension_numbers=(((1,), (1,)), ((), ())),
        preferred_element_type=jnp.float32)           # (blk, blk) f32

    # ---- diagonal terms as row norms (O(blk*d), no (n,n) masks) ------------
    zrf = zr.astype(jnp.float32)
    zcf = zc.astype(jnp.float32)
    sq_r = jnp.sum(zrf * zrf, axis=1, keepdims=True)  # (blk, 1)
    sq_c = jnp.sum(zcf * zcf, axis=1, keepdims=True)  # (blk, 1)

    exponent = sq_r - 2.0 * zz + sq_c.T               # (blk, blk)

    # ---- sigma mixture (exp on the EUP); one reduction per block -----------
    k_mix = jnp.zeros((blk, blk), jnp.float32)
    for s in range(n_sigma):                          # n_sigma static & small
        sigma = sigma_ref[s]
        gamma = -0.5 / (sigma * sigma)
        k_mix = k_mix + jnp.exp(exponent * gamma)

    # ---- factored +/-1 weighting (0 on zero-padded rows/cols) --------------
    row_idx = i * blk + jax.lax.broadcasted_iota(jnp.int32, (blk, 1), 0)
    col_idx = j * blk + jax.lax.broadcasted_iota(jnp.int32, (1, blk), 1)
    one = jnp.float32(1.0)
    neg = jnp.float32(-1.0)
    zero = jnp.float32(0.0)
    sgn_r = jnp.where(row_idx < m, one, jnp.where(row_idx < n, neg, zero))
    sgn_c = jnp.where(col_idx < m, one, jnp.where(col_idx < n, neg, zero))

    col_weighted = jnp.sum(k_mix * sgn_c, axis=1, keepdims=True)  # (blk, 1)
    block_sum = jnp.sum(col_weighted * sgn_r)                     # scalar

    # Off-diagonal blocks stand in for their symmetric partner as well.
    mult = jnp.where(i == j, jnp.float32(1.0), jnp.float32(2.0))
    acc_ref[0] = acc_ref[0] + mult * block_sum

    @pl.when(t == pl.num_programs(0) - 1)
    def _():
        out_ref[0, 0] = acc_ref[0] / jnp.float32(m * m)


def mix_rbf_mmd2(X, Y, sigma_list, *, block=512):
    """JAX/Pallas equivalent of mix_rbf_mmd2_class.forward(X, Y, sigma_list)."""
    assert X.shape[0] == Y.shape[0]
    assert X.shape[1] == Y.shape[1]
    m, d = X.shape
    n = 2 * m
    n_sigma = int(sigma_list.shape[0])

    # Block size: 32-multiple (safe sublane tiling for any input dtype), one
    # block if the whole problem is small, `block` rows otherwise.
    blk = _round_up(n, 32) if n <= block else block
    n_pad = _round_up(n, blk)

    # glue: torch.cat + zero padding in plain JAX; keep source dtype
    Z = jnp.concatenate([X, Y], axis=0)
    if n_pad != n:
        Z = jnp.pad(Z, ((0, n_pad - n), (0, 0)))

    # Upper-triangle block coordinates (symmetry: (j,i) mirrors (i,j)).
    nb = n_pad // blk
    bi_np, bj_np = np.triu_indices(nb)
    bi = jnp.asarray(bi_np, dtype=jnp.int32)
    bj = jnp.asarray(bj_np, dtype=jnp.int32)
    t_total = int(bi.shape[0])

    grid_spec = pltpu.PrefetchScalarGridSpec(
        num_scalar_prefetch=2,
        grid=(t_total,),
        in_specs=[
            pl.BlockSpec(memory_space=pltpu.MemorySpace.SMEM),          # sigma
            pl.BlockSpec((blk, d), lambda t, bi_r, bj_r: (bi_r[t], 0)),  # rows
            pl.BlockSpec((blk, d), lambda t, bi_r, bj_r: (bj_r[t], 0)),  # cols
        ],
        out_specs=pl.BlockSpec(memory_space=pltpu.MemorySpace.SMEM),
        scratch_shapes=[pltpu.SMEM((1,), jnp.float32)],
    )

    out = pl.pallas_call(
        partial(_mmd2_kernel, m=m, n=n, n_sigma=n_sigma, blk=blk),
        out_shape=jax.ShapeDtypeStruct((1, 1), jnp.float32),
        grid_spec=grid_spec,
        compiler_params=pltpu.CompilerParams(
            dimension_semantics=("arbitrary",)),
    )(bi, bj, sigma_list.astype(jnp.float32), Z, Z)
    return out[0, 0]


def _reference(X, Y, sigmas):
    """Pure-JAX mirror of the PyTorch module."""
    m = X.shape[0]
    Z = jnp.concatenate([X, Y], 0).astype(jnp.float32)
    ZZT = Z @ Z.T
    diag = jnp.diag(ZZT)[:, None]
    expo = diag - 2.0 * ZZT + diag.T
    gammas = -1.0 / (2.0 * sigmas.astype(jnp.float32) ** 2)
    K = jnp.sum(jnp.exp(expo[None] * gammas[:, None, None]), axis=0)
    K_XX, K_XY, K_YY = K[:m, :m], K[:m, m:], K[m:, m:]
    mm = float(m * m)
    # (Kt_XX_sum + sum_diag_X) == K_XX.sum(), same for YY
    return K_XX.sum() / mm + K_YY.sum() / mm - 2.0 * K_XY.sum() / mm


if __name__ == "__main__":
    key = jax.random.PRNGKey(0)
    k1, k2, k3, k4, k5, k6 = jax.random.split(key, 6)

    # small shapes consistent with the module: batch m, feature dim d
    m, d = 8, 32
    X = jax.random.normal(k1, (m, d), dtype=jnp.float32)
    Y = jax.random.normal(k2, (m, d), dtype=jnp.float32)
    sigma_list = jnp.array([1.0, 2.0, 4.0, 8.0, 16.0], dtype=jnp.float32)

    mmd2 = jax.block_until_ready(mix_rbf_mmd2(X, Y, sigma_list))
    ref = _reference(X, Y, sigma_list)
    assert jnp.allclose(mmd2, ref, rtol=1e-4, atol=1e-4), (mmd2, ref)

    # second shape to exercise generality
    m2, d2 = 16, 64
    X2 = jax.random.normal(k3, (m2, d2), dtype=jnp.float32)
    Y2 = jax.random.normal(k4, (m2, d2), dtype=jnp.float32)
    mmd2_b = jax.block_until_ready(mix_rbf_mmd2(X2, Y2, sigma_list))
    ref_b = _reference(X2, Y2, sigma_list)
    assert jnp.allclose(mmd2_b, ref_b, rtol=1e-4, atol=1e-4), (mmd2_b, ref_b)

    # third shape: force the multi-block (upper-triangle grid + padding) path
    m3, d3 = 40, 48
    X3 = jax.random.normal(k5, (m3, d3), dtype=jnp.float32)
    Y3 = jax.random.normal(k6, (m3, d3), dtype=jnp.float32)
    mmd2_c = jax.block_until_ready(mix_rbf_mmd2(X3, Y3, sigma_list, block=32))
    ref_c = _reference(X3, Y3, sigma_list)
    assert jnp.allclose(mmd2_c, ref_c, rtol=1e-4, atol=1e-4), (mmd2_c, ref_c)

    print("KERNEL_OK")
</pallas_src>

<mosaic_0001>
module attributes {stable_mosaic.version = 11 : i64} {
  func.func @_mmd2_kernel(%arg0: i32, %arg1: memref<1xi32, #tpu.memory_space<smem>>, %arg2: memref<1xi32, #tpu.memory_space<smem>>, %arg3: memref<5xf32, #tpu.memory_space<smem>>, %arg4: memref<32x32xf32, #tpu.memory_space<vmem>>, %arg5: memref<32x32xf32, #tpu.memory_space<vmem>>, %arg6: memref<1x1xf32, #tpu.memory_space<smem>>, %arg7: memref<1xf32, #tpu.memory_space<smem>>) attributes {dimension_semantics = [#tpu.dimension_semantics<arbitrary>], iteration_bounds = array<i64: 1>, scalar_prefetch = 2 : i64, scratch_operands = 1 : i64, tpu.core_type = #tpu.core_type<tc>, window_params = [{transform_indices = @transform_0, window_bounds = array<i64: 5>}, {transform_indices = @transform_1, window_bounds = array<i64: 32, 32>}, {transform_indices = @transform_2, window_bounds = array<i64: 32, 32>}, {transform_indices = @transform_3, window_bounds = array<i64: 1, 1>}]} {
    %c0_i32 = arith.constant 0 : i32
    %0 = arith.cmpi eq, %arg0, %c0_i32 : i32
    %1 = arith.extui %0 : i1 to i32
    %c0_i32_0 = arith.constant 0 : i32
    %2 = arith.cmpi ne, %1, %c0_i32_0 : i32
    scf.if %2 {
      %cst_31 = arith.constant 0.000000e+00 : f32
      %c0_32 = arith.constant 0 : index
      %103 = memref.load %arg7[%c0_32] : memref<1xf32, #tpu.memory_space<smem>>
      memref.store %cst_31, %arg7[%c0_32] : memref<1xf32, #tpu.memory_space<smem>>
    } else {
    }
    %3 = arith.index_cast %arg0 : i32 to index
    %4 = memref.load %arg1[%3] : memref<1xi32, #tpu.memory_space<smem>>
    %5 = arith.index_cast %arg0 : i32 to index
    %6 = memref.load %arg2[%5] : memref<1xi32, #tpu.memory_space<smem>>
    %c0 = arith.constant 0 : index
    %c0_1 = arith.constant 0 : index
    %7 = vector.load %arg4[%c0, %c0_1] : memref<32x32xf32, #tpu.memory_space<vmem>>, vector<32x32xf32>
    %c0_2 = arith.constant 0 : index
    %c0_3 = arith.constant 0 : index
    %8 = vector.load %arg5[%c0_2, %c0_3] : memref<32x32xf32, #tpu.memory_space<vmem>>, vector<32x32xf32>
    %cst = arith.constant dense<0.000000e+00> : vector<32x32xf32>
    %9 = tpu.matmul %7, %8, %cst {dimension_numbers = #tpu.dot_dimension_numbers<[1], [1], [0], [0], [0, 0, 1, 0], [], []>} : vector<32x32xf32>, vector<32x32xf32>, vector<32x32xf32> -> vector<32x32xf32>
    %10 = arith.mulf %7, %7 : vector<32x32xf32>
    %cst_4 = arith.constant dense<0.000000e+00> : vector<32xf32>
    %11 = vector.multi_reduction <add>, %10, %cst_4 [1] : vector<32x32xf32> to vector<32xf32>
    %12 = vector.shape_cast %11 : vector<32xf32> to vector<32x1xf32>
    %13 = arith.mulf %8, %8 : vector<32x32xf32>
    %cst_5 = arith.constant dense<0.000000e+00> : vector<32xf32>
    %14 = vector.multi_reduction <add>, %13, %cst_5 [1] : vector<32x32xf32> to vector<32xf32>
    %15 = vector.shape_cast %14 : vector<32xf32> to vector<32x1xf32>
    %cst_6 = arith.constant 2.000000e+00 : f32
    %16 = vector.broadcast %cst_6 : f32 to vector<32x32xf32>
    %17 = arith.mulf %16, %9 : vector<32x32xf32>
    %18 = vector.broadcast %12 : vector<32x1xf32> to vector<32x32xf32>
    %19 = arith.subf %18, %17 : vector<32x32xf32>
    %20 = tpu.transpose %15, [1, 0] : vector<32x1xf32> -> vector<1x32xf32>
    %21 = vector.broadcast %20 : vector<1x32xf32> to vector<32x32xf32>
    %22 = arith.addf %19, %21 : vector<32x32xf32>
    %cst_7 = arith.constant 0.000000e+00 : f32
    %23 = vector.broadcast %cst_7 : f32 to vector<32x32xf32>
    %c0_8 = arith.constant 0 : index
    %24 = memref.load %arg3[%c0_8] : memref<5xf32, #tpu.memory_space<smem>>
    %25 = arith.mulf %24, %24 : f32
    %cst_9 = arith.constant -5.000000e-01 : f32
    %26 = arith.divf %cst_9, %25 : f32
    %27 = vector.broadcast %26 : f32 to vector<32x32xf32>
    %28 = arith.mulf %22, %27 : vector<32x32xf32>
    %29 = math.exp %28 : vector<32x32xf32>
    %30 = arith.addf %23, %29 : vector<32x32xf32>
    %c1 = arith.constant 1 : index
    %31 = memref.load %arg3[%c1] : memref<5xf32, #tpu.memory_space<smem>>
    %32 = arith.mulf %31, %31 : f32
    %cst_10 = arith.constant -5.000000e-01 : f32
    %33 = arith.divf %cst_10, %32 : f32
    %34 = vector.broadcast %33 : f32 to vector<32x32xf32>
    %35 = arith.mulf %22, %34 : vector<32x32xf32>
    %36 = math.exp %35 : vector<32x32xf32>
    %37 = arith.addf %30, %36 : vector<32x32xf32>
    %c2 = arith.constant 2 : index
    %38 = memref.load %arg3[%c2] : memref<5xf32, #tpu.memory_space<smem>>
    %39 = arith.mulf %38, %38 : f32
    %cst_11 = arith.constant -5.000000e-01 : f32
    %40 = arith.divf %cst_11, %39 : f32
    %41 = vector.broadcast %40 : f32 to vector<32x32xf32>
    %42 = arith.mulf %22, %41 : vector<32x32xf32>
    %43 = math.exp %42 : vector<32x32xf32>
    %44 = arith.addf %37, %43 : vector<32x32xf32>
    %c3 = arith.constant 3 : index
    %45 = memref.load %arg3[%c3] : memref<5xf32, #tpu.memory_space<smem>>
    %46 = arith.mulf %45, %45 : f32
    %cst_12 = arith.constant -5.000000e-01 : f32
    %47 = arith.divf %cst_12, %46 : f32
    %48 = vector.broadcast %47 : f32 to vector<32x32xf32>
    %49 = arith.mulf %22, %48 : vector<32x32xf32>
    %50 = math.exp %49 : vector<32x32xf32>
    %51 = arith.addf %44, %50 : vector<32x32xf32>
    %c4 = arith.constant 4 : index
    %52 = memref.load %arg3[%c4] : memref<5xf32, #tpu.memory_space<smem>>
    %53 = arith.mulf %52, %52 : f32
    %cst_13 = arith.constant -5.000000e-01 : f32
    %54 = arith.divf %cst_13, %53 : f32
    %55 = vector.broadcast %54 : f32 to vector<32x32xf32>
    %56 = arith.mulf %22, %55 : vector<32x32xf32>
    %57 = math.exp %56 : vector<32x32xf32>
    %58 = arith.addf %51, %57 : vector<32x32xf32>
    %c32_i32 = arith.constant 32 : i32
    %59 = arith.muli %4, %c32_i32 : i32
    %60 = tpu.iota {dimensions = array<i32: 0>} : vector<32x1xi32>
    %61 = vector.broadcast %59 : i32 to vector<32x1xi32>
    %62 = arith.addi %61, %60 : vector<32x1xi32>
    %c32_i32_14 = arith.constant 32 : i32
    %63 = arith.muli %6, %c32_i32_14 : i32
    %64 = tpu.iota {dimensions = array<i32: 1>} : vector<1x32xi32>
    %65 = vector.broadcast %63 : i32 to vector<1x32xi32>
    %66 = arith.addi %65, %64 : vector<1x32xi32>
    %c8_i32 = arith.constant 8 : i32
    %67 = vector.broadcast %c8_i32 : i32 to vector<32x1xi32>
    %68 = arith.cmpi slt, %62, %67 : vector<32x1xi32>
    %c16_i32 = arith.constant 16 : i32
    %69 = vector.broadcast %c16_i32 : i32 to vector<32x1xi32>
    %70 = arith.cmpi slt, %62, %69 : vector<32x1xi32>
    %cst_15 = arith.constant -1.000000e+00 : f32
    %cst_16 = arith.constant 0.000000e+00 : f32
    %71 = vector.broadcast %cst_15 : f32 to vector<32x1xf32>
    %72 = vector.broadcast %cst_16 : f32 to vector<32x1xf32>
    %73 = arith.select %70, %71, %72 : vector<32x1xi1>, vector<32x1xf32>
    %cst_17 = arith.constant 1.000000e+00 : f32
    %74 = vector.broadcast %cst_17 : f32 to vector<32x1xf32>
    %75 = arith.select %68, %74, %73 : vector<32x1xi1>, vector<32x1xf32>
    %c8_i32_18 = arith.constant 8 : i32
    %76 = vector.broadcast %c8_i32_18 : i32 to vector<1x32xi32>
    %77 = arith.cmpi slt, %66, %76 : vector<1x32xi32>
    %c16_i32_19 = arith.constant 16 : i32
    %78 = vector.broadcast %c16_i32_19 : i32 to vector<1x32xi32>
    %79 = arith.cmpi slt, %66, %78 : vector<1x32xi32>
    %cst_20 = arith.constant -1.000000e+00 : f32
    %cst_21 = arith.constant 0.000000e+00 : f32
    %80 = vector.broadcast %cst_20 : f32 to vector<1x32xf32>
    %81 = vector.broadcast %cst_21 : f32 to vector<1x32xf32>
    %82 = arith.select %79, %80, %81 : vector<1x32xi1>, vector<1x32xf32>
    %cst_22 = arith.constant 1.000000e+00 : f32
    %83 = vector.broadcast %cst_22 : f32 to vector<1x32xf32>
    %84 = arith.select %77, %83, %82 : vector<1x32xi1>, vector<1x32xf32>
    %85 = vector.broadcast %84 : vector<1x32xf32> to vector<32x32xf32>
    %86 = arith.mulf %58, %85 : vector<32x32xf32>
    %cst_23 = arith.constant dense<0.000000e+00> : vector<32xf32>
    %87 = vector.multi_reduction <add>, %86, %cst_23 [1] : vector<32x32xf32> to vector<32xf32>
    %88 = vector.shape_cast %87 : vector<32xf32> to vector<32x1xf32>
    %89 = arith.mulf %88, %75 : vector<32x1xf32>
    %90 = vector.shape_cast %89 : vector<32x1xf32> to vector<1x32x1xf32>
    %cst_24 = arith.constant dense<0.000000e+00> : vector<1xf32>
    %91 = vector.multi_reduction <add>, %90, %cst_24 [1, 2] : vector<1x32x1xf32> to vector<1xf32>
    %92 = vector.shape_cast %91 : vector<1xf32> to vector<1x1x1xf32>
    %93 = vector.extract %92[0, 0, 0] : f32 from vector<1x1x1xf32>
    %94 = arith.cmpi eq, %4, %6 : i32
    %cst_25 = arith.constant 1.000000e+00 : f32
    %cst_26 = arith.constant 2.000000e+00 : f32
    %95 = arith.select %94, %cst_25, %cst_26 : f32
    %c0_27 = arith.constant 0 : index
    %96 = memref.load %arg7[%c0_27] : memref<1xf32, #tpu.memory_space<smem>>
    %97 = arith.mulf %95, %93 : f32
    %98 = arith.addf %96, %97 : f32
    %c0_28 = arith.constant 0 : index
    %99 = memref.load %arg7[%c0_28] : memref<1xf32, #tpu.memory_space<smem>>
    memref.store %98, %arg7[%c0_28] : memref<1xf32, #tpu.memory_space<smem>>
    %c0_i32_29 = arith.constant 0 : i32
    %100 = arith.cmpi eq, %arg0, %c0_i32_29 : i32
    %101 = arith.extui %100 : i1 to i32
    %c0_i32_30 = arith.constant 0 : i32
    %102 = arith.cmpi ne, %101, %c0_i32_30 : i32
    scf.if %102 {
      %c0_31 = arith.constant 0 : index
      %103 = memref.load %arg7[%c0_31] : memref<1xf32, #tpu.memory_space<smem>>
      %cst_32 = arith.constant 6.400000e+01 : f32
      %104 = arith.divf %103, %cst_32 : f32
      %c0_33 = arith.constant 0 : index
      %c0_34 = arith.constant 0 : index
      %105 = memref.load %arg6[%c0_33, %c0_34] : memref<1x1xf32, #tpu.memory_space<smem>>
      memref.store %104, %arg6[%c0_33, %c0_34] : memref<1x1xf32, #tpu.memory_space<smem>>
    } else {
    }
    return
  }
  func.func @transform_0(%arg0: i32, %arg1: memref<1xi32, #tpu.memory_space<smem>>, %arg2: memref<1xi32, #tpu.memory_space<smem>>) -> i32 {
    %c0_i32 = arith.constant 0 : i32
    %c0_i32_0 = arith.constant 0 : i32
    return %c0_i32 : i32
  }
  func.func @transform_1(%arg0: i32, %arg1: memref<1xi32, #tpu.memory_space<smem>>, %arg2: memref<1xi32, #tpu.memory_space<smem>>) -> (i32, i32) {
    %0 = arith.index_cast %arg0 : i32 to index
    %1 = memref.load %arg1[%0] : memref<1xi32, #tpu.memory_space<smem>>
    %c0_i32 = arith.constant 0 : i32
    %c0_i32_0 = arith.constant 0 : i32
    return %1, %c0_i32 : i32, i32
  }
  func.func @transform_2(%arg0: i32, %arg1: memref<1xi32, #tpu.memory_space<smem>>, %arg2: memref<1xi32, #tpu.memory_space<smem>>) -> (i32, i32) {
    %0 = arith.index_cast %arg0 : i32 to index
    %1 = memref.load %arg2[%0] : memref<1xi32, #tpu.memory_space<smem>>
    %c0_i32 = arith.constant 0 : i32
    %c0_i32_0 = arith.constant 0 : i32
    return %1, %c0_i32 : i32, i32
  }
  func.func @transform_3(%arg0: i32, %arg1: memref<1xi32, #tpu.memory_space<smem>>, %arg2: memref<1xi32, #tpu.memory_space<smem>>) -> (i32, i32) {
    %c0_i32 = arith.constant 0 : i32
    %c0_i32_0 = arith.constant 0 : i32
    %c0_i32_1 = arith.constant 0 : i32
    return %c0_i32, %c0_i32_0 : i32, i32
  }
}

</mosaic_0001>

<bundles_post_ra>
// kernel: tpu_custom_call.1
= control target key start
LH: loop header
LB: loop body
LE: loop exit
PB: predicated region body
PF: predicated region fallthrough
CT: control target
= control target key end

     0   :  { %12 = vsyncpa [#allocation9], 0  ;;  %s849_s0 = inlined_call_operand.<no memory space> [shape: s32[1], index: 0, kind: input, shape index: {}]   ;;  %s850_s1 = inlined_call_operand.<no memory space> [shape: s32[1], index: 1, kind: input, shape index: {}]   ;;  %s851_s2 = inlined_call_operand.vmem [shape: f32[5], index: 2, kind: input, shape index: {}]   ;;  %s852_s3 = inlined_call_operand.hbm [shape: f32[32,32], index: 3, kind: input, shape index: {}]   ;;  %s853_s4 = inlined_call_operand.hbm [shape: f32[32,32], index: 4, kind: input, shape index: {}]   ;;  %s854_s5 = inlined_call_operand.hbm [shape: f32[1,1], index: 5, kind: output, shape index: {}]  }
   0x1   :  { %13 = vsyncpa [#allocation7], 0 }
   0x2   :  { %14 = vsyncpa [#allocation12], 0 }
   0x3   :  { %15 = vsyncpa [#allocation8], 0  ;;  %s22_s20 = sshll.u32 %s851_s2, 4  ;;  %s520_s23 = sshll.u32 %s849_s0, 9  ;;  %s23_s20 = int_to_ptr.vmem [resolvable:$true] %s22_s20 }
   0x4   :  { %s629_s24 = scalar_lea.vmem %s23_s20, 16  ;;  %p634_p1 = scmp.lt.s32.totalorder %s23_s20, %s23_s20 }
   0x5   :  { %p630_p0 = scmp.ne.s32.totalorder %s23_s20, %s629_s24  ;;  %p635_p2 = scmp.lt.s32.totalorder %s629_s24, %s629_s24 }
   0x7   :  { %p636_p3 = por %p635_p2, %p634_p1 }
   0x9   :  { %p637_p4 = pnand %p636_p3, %p630_p0 }
   0xb   :  { %640 = shalt.err (!%p637_p4)
}
   0xc   :  { %s707_s25 = smov [#allocation6]   ;;  %s34_s28 = scalar_lea.hbm %s852_s3, %s520_s23 }
   0xd   :  { %25 = dma.vmem_to_smem %s23_s20, 16, %s707_s25, [#allocation9]  }
   0xe   :  { %s708_s29 = smov [#allocation10]   ;;  %s641_s30 = scalar_lea.hbm %s34_s28, 512 }
   0xf   :  { %s35_s2 = sshll.u32 %s708_s29, 4  ;;  %p642_p5 = scmp.ne.s32.totalorder %s34_s28, %s641_s30  ;;  %s36_s2 = int_to_ptr.vmem [resolvable:$true] %s35_s2 }
  0x10   :  { %s643_s8 = scalar_lea.hbm %s852_s3, 512  ;;  %p644_p6 = scmp.lt.u32.totalorder %s34_s28, %s852_s3 }
  0x11   :  { %p645_p7 = scmp.lt.u32.totalorder %s643_s8, %s641_s30  ;;  %p647_p9 = scmp.lt.u32.totalorder %s641_s30, %s34_s28 }
  0x13   :  { %p646_p8 = por %p645_p7, %p644_p6 }
  0x15   :  { %p648_p10 = por %p647_p9, %p646_p8 }
  0x17   :  { %p649_p11 = pnand %p648_p10, %p642_p5 }
  0x19   :  { %652 = shalt.err (!%p649_p11)
}
  0x1a   :  { %s653_s11 = scalar_lea.vmem %s36_s2, 512  ;;  %p658_p13 = scmp.lt.s32.totalorder %s36_s2, %s36_s2 }
  0x1b   :  { %p654_p12 = scmp.ne.s32.totalorder %s36_s2, %s653_s11  ;;  %p659_p0 = scmp.lt.s32.totalorder %s653_s11, %s653_s11 }
  0x1d   :  { %p660_p1 = por %p659_p0, %p658_p13 }
  0x1f   :  { %p661_p2 = pnand %p660_p1, %p654_p12 }
  0x21   :  { %664 = shalt.err (!%p661_p2)
}
  0x22   :  { %s709_s12 = smov 128   ;;  %s710_s13 = smov 8  }
  0x23   :  { %41 = dma.hbm_to_vmem [thread:$0]  %s34_s28, 512, %s36_s2, [#allocation7], %s709_s12, %s709_s12, %s710_s13  }
  0x24   :  { %s521_s3 = sshll.u32 %s850_s1, 9  ;;  %s711_s19 = smov [#allocation11]  }
  0x25   :  { %s50_s18 = scalar_lea.hbm %s853_s4, %s521_s3  ;;  %s51_s20 = sshll.u32 %s711_s19, 4  ;;  %s52_s20 = int_to_ptr.vmem [resolvable:$true] %s51_s20 }
  0x26   :  { %s665_s21 = scalar_lea.hbm %s50_s18, 512  ;;  %s667_s24 = scalar_lea.hbm %s853_s4, 512 }
  0x27   :  { %p666_p3 = scmp.ne.s32.totalorder %s50_s18, %s665_s21  ;;  %p668_p4 = scmp.lt.u32.totalorder %s50_s18, %s853_s4 }
  0x28   :  { %p669_p5 = scmp.lt.u32.totalorder %s667_s24, %s665_s21  ;;  %p671_p7 = scmp.lt.u32.totalorder %s665_s21, %s50_s18 }
  0x2a   :  { %p670_p6 = por %p669_p5, %p668_p4 }
  0x2c   :  { %p672_p8 = por %p671_p7, %p670_p6 }
  0x2e   :  { %p673_p9 = pnand %p672_p8, %p666_p3 }
  0x30   :  { %676 = shalt.err (!%p673_p9)
}
  0x31   :  { %s677_s27 = scalar_lea.vmem %s52_s20, 512  ;;  %p682_p11 = scmp.lt.s32.totalorder %s52_s20, %s52_s20 }
  0x32   :  { %p678_p10 = scmp.ne.s32.totalorder %s52_s20, %s677_s27  ;;  %p683_p12 = scmp.lt.s32.totalorder %s677_s27, %s677_s27 }
  0x34   :  { %p684_p13 = por %p683_p12, %p682_p11 }
  0x36   :  { %p685_p0 = pnand %p684_p13, %p678_p10 }
  0x38   :  { %688 = shalt.err (!%p685_p0)
}
  0x39   :  { %57 = dma.hbm_to_vmem [thread:$0]  %s50_s18, 512, %s52_s20, [#allocation12], %s709_s12, %s709_s12, %s710_s13  }
  0x3a   :  { %699 = dma.done.wait [#allocation9], 16  }
  0x3b   :  { %700 = vsyncadd [#allocation9], 4294967280 }
  0x3c   :  { %701 = dma.done.wait [#allocation7], 512  }
  0x3d   :  { %702 = vsyncadd [#allocation7], 4294966784 }
  0x3e   :  { %703 = dma.done.wait [#allocation12], 512  }
  0x3f   :  { %704 = vsyncadd [#allocation12], 4294966784 }
  0x40   :  { %67 = sfence }
  0x41   :  { %v84_v0 = vld [vmem:[#allocation11] sm:$0xff]  ;;  %vm88_vm0 = vcmask 261120   ;;  %v85_v1 = vld [vmem:[#allocation11 + $0x8] sm:$0xff]  ;;  %v86_v2 = vld [vmem:[#allocation11 + $0x10] sm:$0xff]  ;;  %s278_s4 = sld [smem:[#allocation6]]  ;;  %s514_s28 = sld [smem:[#allocation6 + $0x1]]  ;;  %v270_v45 = vlaneseq }
  0x42   :  { %v214_v3 = vmul.f32 %v84_v0, %v84_v0  ;;  %v215_v4 = vmul.f32 %v85_v1, %v85_v1  ;;  %v544_v5 = vpack.c.bf16 %v85_v1, %v84_v0  ;;  %vm773_vm1 = vmpackc.low %vm88_vm0, %vm88_vm0  ;;  %v216_v7 = vmul.f32 %v86_v2, %v86_v2  ;;  %v87_v8 = vld [vmem:[#allocation11 + $0x18] sm:$0xff]  ;;  %v80_v9 = vld [vmem:[#allocation10] sm:$0xff]  ;;  %s515_s29 = sld [smem:[#allocation6 + $0x2]]  ;;  %s516_s2 = sld [smem:[#allocation6 + $0x3]] }
  0x43   :  { %v217_v10 = vmul.f32 %v87_v8, %v87_v8  ;;  %v550_v11 = vpack.c.bf16 %v87_v8, %v86_v2  ;;  %538 = vmatprep.mubr.msk.f32.mxu0 %vm88_vm0, %v80_v9  ;;  %v82_v14 = vld [vmem:[#allocation10 + $0x10] sm:$0xff]  ;;  %v198_v16 = vmul.f32 %v80_v9, %v80_v9  ;;  %v81_v17 = vld [vmem:[#allocation10 + $0x8] sm:$0xff]  ;;  %v83_v21 = vld [vmem:[#allocation10 + $0x18] sm:$0xff]  ;;  %s517_s30 = sld [smem:[#allocation6 + $0x4]]  ;;  %v806_v48 = vshrl.u32 %v270_v45, 7  ;;  %s519_s22 = sshll.u32 %s850_s1, 5 }
  0x44   :  { %v218_v12 = vsel %vm88_vm0, %v214_v3, 0.0  ;;  %546 = vmatprep.subr.msk.bf16.mxu0 %vm773_vm1, %v544_v5  ;;  %v224_v13 = vsel %vm88_vm0, %v216_v7, 0.0  ;;  %556 = vmatprep.subr.msk.bf16.mxu1 %vm773_vm1, %v544_v5  ;;  %v221_v15 = vsel %vm88_vm0, %v215_v4, 0.0  ;;  %v199_v19 = vmul.f32 %v81_v17, %v81_v17  ;;  %s518_s25 = sshll.u32 %s849_s0, 5  ;;  %p466_p1 = scmp.eq.s32.totalorder %s849_s0, %s850_s1 }
  0x45   :  { %219 = vadd.xlane.f32.xlu0 %v218_v12  ;;  %549 = vmatpush3.bf16.xpose.msk.msra.mxu0 %vm773_vm1, %v544_v5  ;;  %v227_v18 = vsel %vm88_vm0, %v217_v10, 0.0  ;;  %v200_v20 = vmul.f32 %v82_v14, %v82_v14  ;;  %v202_v22 = vsel %vm88_vm0, %v198_v16, 0.0  ;;  %v201_v24 = vmul.f32 %v83_v21, %v83_v21 }
  0x46   :  { %225 = vadd.xlane.f32.xlu1 %v224_v13  ;;  %558 = vmatpush3.bf16.xpose.msk.msra.mxu1 %vm773_vm1, %v544_v5  ;;  %v205_v23 = vsel %vm88_vm0, %v199_v19, 0.0  ;;  %v272_v55 = vsub.s32 0, %v806_v48  ;;  %vm449_vm12 = vcmask 7168  }
  0x47   :  { %552 = vmatprep.subr.msk.bf16.mxu0 %vm773_vm1, %v550_v11  ;;  %557 = vmatprep.subr.msk.bf16.mxu1 %vm773_vm1, %v550_v11  ;;  %v208_v25 = vsel %vm88_vm0, %v200_v20, 0.0  ;;  %v211_v26 = vsel %vm88_vm0, %v201_v24, 0.0  ;;  %s279_s6 = smul.f32 %s278_s4, %s278_s4 }
  0x48   :  { %541 = vmatprep.mubr.msk.f32.mxu1 %vm88_vm0, %v82_v14  ;;  %s302_s7 = smul.f32 %s514_s28, %s514_s28 }
  0x49   :  { %222 = vadd.xlane.f32.xlu0 %v221_v15  ;;  %v280_v27 = vstv %s279_s6  ;;  %s325_s8 = smul.f32 %s515_s29, %s515_s29 }
  0x4a   :  { %228 = vadd.xlane.f32.xlu1 %v227_v18  ;;  %579 = vrcp.f32 %v280_v27  ;;  %v303_v28 = vstv %s302_s7  ;;  %s348_s9 = smul.f32 %s516_s2, %s516_s2 }
  0x4b   :  { %581 = vrcp.f32 %v303_v28  ;;  %v326_v29 = vstv %s325_s8  ;;  %s371_s10 = smul.f32 %s517_s30, %s517_s30 }
  0x4c   :  { %583 = vrcp.f32 %v326_v29  ;;  %v349_v30 = vstv %s348_s9  ;;  %s467_s29 = scalar_select %p466_p1, 1.0, 2.0 }
  0x4d   :  { %555 = vmatpush3.bf16.xpose.msk.msra.mxu0 %vm773_vm1, %v550_v11  ;;  %203 = vadd.xlane.f32.xlu0 %v202_v22  ;;  %585 = vrcp.f32 %v349_v30  ;;  %v372_v31 = vstv %s371_s10  ;;  %s689_s9 = scalar_lea.hbm %s854_s5, 16 }
  0x4e   :  { %559 = vmatpush3.bf16.xpose.msk.msra.mxu1 %vm773_vm1, %v550_v11  ;;  %206 = vadd.xlane.f32.xlu1 %v205_v23  ;;  %587 = vrcp.f32 %v372_v31  ;;  %p690_p2 = scmp.ne.s32.totalorder %s854_s5, %s689_s9  ;;  %p693_p3 = scmp.lt.u32.totalorder %s689_s9, %s854_s5 }
  0x50   :  { %p695_p4 = pnand %p693_p3, %p690_p2 }
  0x51   :  { %209 = vadd.xlane.f32.xlu0 %v208_v25 }
  0x52   :  { %212 = vadd.xlane.f32.xlu1 %v211_v26 }
  0x54   :  { %539 = vmatmul.mubr.msk.f32.vlgmr.msra.gmra.mrb[0].mxu0 %vm88_vm0, %v81_v17  ;;  %v580_v32 = vpop.eup %579 }
  0x55   :  { %542 = vmatmul.mubr.msk.f32.vlgmr.msra.gmra.mrb[0].mxu1 %vm88_vm0, %v83_v21  ;;  %v582_v33 = vpop.eup %581  ;;  %560 = vpush %v580_v32 }
  0x56   :  { %v584_v34 = vpop.eup %583  ;;  %562 = vpush %v582_v33 }
  0x57   :  { %v586_v35 = vpop.eup %585  ;;  %564 = vpush %v584_v34 }
  0x58   :  { %v588_v36 = vpop.eup %587  ;;  %566 = vpush %v586_v35 }
  0x59   :  { %568 = vpush %v588_v36 }
  0x86   :  { %s561_s11 = spop %560 }
  0x87   :  { %s563_s12 = spop %562  ;;  %s283_s13 = smul.f32 -0.5, %s561_s11 }
  0x88   :  { %s306_s14 = smul.f32 -0.5, %s563_s12  ;;  %s565_s15 = spop %564 }
  0x89   :  { %v284_v62 = vstv %s283_s13  ;;  %s329_s3 = smul.f32 -0.5, %s565_s15  ;;  %s567_s16 = spop %566 }
  0x8a   :  { %v307_v63 = vstv %s306_s14  ;;  %s352_s17 = smul.f32 -0.5, %s567_s16  ;;  %s569_s18 = spop %568 }
  0x8b   :  { %v330_v9 = vstv %s329_s3  ;;  %s375_s19 = smul.f32 -0.5, %s569_s18 }
  0x8c   :  { %v353_v19 = vstv %s352_s17 }
  0x8d   :  { %v376_v28 = vstv %s375_s19 }
  0xd2   :  { %v220_v37 = vpop.xlane.xlu0 %219 }
  0xd3   :  { %238 = vxpose.xlu0.b32.start [1/4] (short) (narrow) %v220_v37, 8  ;;  %v226_v39 = vpop.xlane.xlu1 %225 }
  0xd6   :  { %v223_v38 = vpop.xlane.xlu0 %222 }
  0xd7   :  { %239 = vxpose.xlu0.b32.cont [2/4] (short) (narrow) %v223_v38, 8  ;;  %v229_v40 = vpop.xlane.xlu1 %228 }
  0xda   :  { %v204_v46 = vpop.xlane.xlu0 %203 }
  0xdb   :  { %240 = vxpose.xlu0.b32.cont [3/4] (short) (narrow) %v226_v39, 8  ;;  %v207_v47 = vpop.xlane.xlu1 %206 }
  0xde   :  { %v210_v51 = vpop.xlane.xlu0 %209 }
  0xdf   :  { %241 = vxpose.xlu0.b32.end [4/4] (short) (narrow) %v229_v40, 8  ;;  %v213_v52 = vpop.xlane.xlu1 %212  ;;  %v406_v40 = vand.u32 127, %v270_v45 }
 0x127   :  { %v540_v41 = vpop.f32.mrb[0].mxu0 }
 0x128   :  { %v179_v42 = vpop.f32.mrb[1].mxu0  ;;  %v543_v43 = vpop.f32.mrb[0].mxu1  ;;  %v231_v49 = vmul.f32 2.0, %v540_v41 }
 0x129   :  { %v189_v44 = vpop.f32.mrb[1].mxu1  ;;  %v233_v50 = vmul.f32 2.0, %v543_v43  ;;  %v230_v53 = vmul.f32 2.0, %v179_v42 }
 0x12a   :  { %v232_v54 = vmul.f32 2.0, %v189_v44  ;;  %v235_v56 = vsub.f32 %v207_v47, %v231_v49  ;;  %v407_v44 = vstv %s519_s22 }
 0x12b   :  { %v237_v57 = vsub.f32 %v213_v52, %v233_v50  ;;  %v234_v59 = vsub.f32 %v204_v46, %v230_v53  ;;  %v408_v52 = vadd.s32 %v407_v44, %v406_v40  ;;  %v398_v40 = vadd.s32 24, %v806_v48 }
 0x12c   :  { %v236_v60 = vsub.f32 %v210_v51, %v232_v54 }
 0x12d   :  { %vm426_vm2 = vcmp.lt.s32.totalorder %v408_v52, 16  ;;  %vm425_vm3 = vcmp.lt.s32.totalorder %v408_v52, 8 }
 0x153   :  { %v254_v58 = vpop.trf.xlu0 }
 0x154   :  { %v273_v61 = vrot.slane %v254_v58, %v272_v55 }
 0x156   :  { %v274_v0 = vadd.f32 %v273_v61, %v234_v59  ;;  %v275_v1 = vadd.f32 %v273_v61, %v235_v56  ;;  %v276_v2 = vadd.f32 %v273_v61, %v236_v60  ;;  %v809_v3 = vadd.f32 %v273_v61, %v237_v57 }
 0x158   :  { %v285_v4 = vmul.f32 %v284_v62, %v274_v0  ;;  %v286_v5 = vmul.f32 %v284_v62, %v275_v1  ;;  %v287_v6 = vmul.f32 %v284_v62, %v276_v2  ;;  %v308_v7 = vmul.f32 %v307_v63, %v274_v0 }
 0x159   :  { %v309_v8 = vmul.f32 %v307_v63, %v275_v1  ;;  %v288_v10 = vmul.f32 %v284_v62, %v809_v3  ;;  %v310_v14 = vmul.f32 %v307_v63, %v276_v2  ;;  %v331_v16 = vmul.f32 %v330_v9, %v274_v0 }
 0x15a   :  { %v289_v11 = vmul.f32 1.442695, %v285_v4  ;;  %v291_v12 = vmul.f32 1.442695, %v286_v5  ;;  %v293_v13 = vmul.f32 1.442695, %v287_v6  ;;  %v332_v18 = vmul.f32 %v330_v9, %v275_v1 }
 0x15b   :  { %v312_v15 = vmul.f32 1.442695, %v308_v7  ;;  %v314_v17 = vmul.f32 1.442695, %v309_v8  ;;  %v295_v20 = vmul.f32 1.442695, %v288_v10  ;;  %v311_v21 = vmul.f32 %v307_v63, %v809_v3 }
 0x15c   :  { %589 = vpow2.f32 %v289_v11  ;;  %v316_v22 = vmul.f32 1.442695, %v310_v14  ;;  %v333_v23 = vmul.f32 %v330_v9, %v276_v2  ;;  %v335_v24 = vmul.f32 1.442695, %v331_v16 }
 0x15d   :  { %591 = vpow2.f32 %v291_v12  ;;  %v354_v25 = vmul.f32 %v353_v19, %v274_v0  ;;  %v337_v26 = vmul.f32 1.442695, %v332_v18  ;;  %v355_v27 = vmul.f32 %v353_v19, %v275_v1 }
 0x15e   :  { %593 = vpow2.f32 %v293_v13  ;;  %v318_v29 = vmul.f32 1.442695, %v311_v21  ;;  %v334_v30 = vmul.f32 %v330_v9, %v809_v3  ;;  %v339_v31 = vmul.f32 1.442695, %v333_v23 }
 0x15f   :  { %595 = vpow2.f32 %v312_v15  ;;  %v356_v32 = vmul.f32 %v353_v19, %v276_v2  ;;  %v358_v33 = vmul.f32 1.442695, %v354_v25  ;;  %v377_v34 = vmul.f32 %v376_v28, %v274_v0 }
 0x160   :  { %597 = vpow2.f32 %v314_v17  ;;  %v360_v35 = vmul.f32 1.442695, %v355_v27  ;;  %v378_v36 = vmul.f32 %v376_v28, %v275_v1  ;;  %v341_v37 = vmul.f32 1.442695, %v334_v30 }
 0x161   :  { %599 = vpow2.f32 %v295_v20  ;;  %v362_v39 = vmul.f32 1.442695, %v356_v32  ;;  %v357_v42 = vmul.f32 %v353_v19, %v809_v3  ;;  %v381_v43 = vmul.f32 1.442695, %v377_v34 }
 0x162   :  { %601 = vpow2.f32 %v316_v22  ;;  %v379_v47 = vmul.f32 %v376_v28, %v276_v2  ;;  %v383_v49 = vmul.f32 1.442695, %v378_v36  ;;  %v380_v57 = vmul.f32 %v376_v28, %v809_v3 }
 0x163   :  { %603 = vpow2.f32 %v335_v24  ;;  %v364_v54 = vmul.f32 1.442695, %v357_v42  ;;  %v712_v6 = vmov 0.0   ;;  %v396_v34 = vadd.s32 8, %v806_v48 }
 0x164   :  { %605 = vpow2.f32 %v337_v26  ;;  %v385_v58 = vmul.f32 1.442695, %v379_v47  ;;  %v387_v2 = vmul.f32 1.442695, %v380_v57  ;;  %v427_v7 = vsel %vm426_vm2, -1.0, %v712_v6 }
 0x165   :  { %607 = vpow2.f32 %v318_v29  ;;  %v428_v15 = vsel %vm425_vm3, 1.0, %v427_v7 }
 0x166   :  { %v590_v38 = vpop.eup %589  ;;  %609 = vpow2.f32 %v339_v31 }
 0x167   :  { %v592_v41 = vpop.eup %591  ;;  %611 = vpow2.f32 %v358_v33 }
 0x168   :  { %v594_v46 = vpop.eup %593  ;;  %613 = vpow2.f32 %v360_v35  ;;  %v399_v35 = vstv %s518_s25 }
 0x169   :  { %v596_v50 = vpop.eup %595  ;;  %615 = vpow2.f32 %v341_v37  ;;  %v400_v36 = vadd.s32 %v399_v35, %v806_v48  ;;  %v397_v37 = vadd.s32 16, %v806_v48 }
 0x16a   :  { %v598_v51 = vpop.eup %597  ;;  %617 = vpow2.f32 %v362_v39  ;;  %v320_v45 = vadd.f32 %v596_v50, %v590_v38  ;;  %v401_v38 = vadd.s32 %v399_v35, %v396_v34 }
 0x16b   :  { %v600_v53 = vpop.eup %599  ;;  %619 = vpow2.f32 %v381_v43  ;;  %v321_v55 = vadd.f32 %v598_v51, %v592_v41  ;;  %vm413_vm4 = vcmp.lt.s32.totalorder %v400_v36, 16  ;;  %v402_v39 = vadd.s32 %v399_v35, %v397_v37 }
 0x16c   :  { %v602_v56 = vpop.eup %601  ;;  %621 = vpow2.f32 %v383_v49  ;;  %vm414_vm5 = vcmp.lt.s32.totalorder %v401_v38, 16  ;;  %vm409_vm6 = vcmp.lt.s32.totalorder %v400_v36, 8  ;;  %v417_v41 = vsel %vm413_vm4, -1.0, %v712_v6 }
 0x16d   :  { %v604_v59 = vpop.eup %603  ;;  %623 = vpow2.f32 %v364_v54  ;;  %v322_v0 = vadd.f32 %v602_v56, %v594_v46  ;;  %vm415_vm7 = vcmp.lt.s32.totalorder %v402_v39, 16  ;;  %v403_v43 = vadd.s32 %v399_v35, %v398_v40 }
 0x16e   :  { %v606_v60 = vpop.eup %605  ;;  %v343_v63 = vadd.f32 %v604_v59, %v320_v45  ;;  %625 = vpow2.f32 %v385_v58  ;;  %vm410_vm8 = vcmp.lt.s32.totalorder %v401_v38, 8  ;;  %v418_v44 = vsel %vm414_vm5, -1.0, %v712_v6 }
 0x16f   :  { %v608_v61 = vpop.eup %607  ;;  %v344_v62 = vadd.f32 %v606_v60, %v321_v55  ;;  %627 = vpow2.f32 %v387_v2  ;;  %v421_v46 = vsel %vm409_vm6, 1.0, %v417_v41  ;;  %vm411_vm9 = vcmp.lt.s32.totalorder %v402_v39, 8 }
 0x170   :  { %v610_v1 = vpop.eup %609  ;;  %v323_v11 = vadd.f32 %v608_v61, %v600_v53  ;;  %v419_v47 = vsel %vm415_vm7, -1.0, %v712_v6  ;;  %v422_v49 = vsel %vm410_vm8, 1.0, %v418_v44  ;;  %vm416_vm10 = vcmp.lt.s32.totalorder %v403_v43, 16 }
 0x171   :  { %v612_v4 = vpop.eup %611  ;;  %v345_v10 = vadd.f32 %v610_v1, %v322_v0  ;;  %v423_v52 = vsel %vm411_vm9, 1.0, %v419_v47  ;;  %vm412_vm11 = vcmp.lt.s32.totalorder %v403_v43, 8  ;;  %v420_v54 = vsel %vm416_vm10, -1.0, %v712_v6 }
 0x172   :  { %v614_v5 = vpop.eup %613  ;;  %v366_v9 = vadd.f32 %v612_v4, %v343_v63  ;;  %v424_v56 = vsel %vm412_vm11, 1.0, %v420_v54 }
 0x173   :  { %v616_v8 = vpop.eup %615  ;;  %v367_v3 = vadd.f32 %v614_v5, %v344_v62 }
 0x174   :  { %v618_v12 = vpop.eup %617  ;;  %v346_v19 = vadd.f32 %v616_v8, %v323_v11 }
 0x175   :  { %v620_v13 = vpop.eup %619  ;;  %v368_v18 = vadd.f32 %v618_v12, %v345_v10 }
 0x176   :  { %v622_v14 = vpop.eup %621  ;;  %v389_v17 = vadd.f32 %v620_v13, %v366_v9 }
 0x177   :  { %v390_v16 = vadd.f32 %v622_v14, %v367_v3  ;;  %v624_v20 = vpop.eup %623 }
 0x178   :  { %v626_v22 = vpop.eup %625  ;;  %v429_v24 = vmul.f32 %v428_v15, %v389_v17  ;;  %v369_v26 = vadd.f32 %v624_v20, %v346_v19 }
 0x179   :  { %v430_v21 = vmul.f32 %v428_v15, %v390_v16  ;;  %v391_v25 = vadd.f32 %v626_v22, %v368_v18  ;;  %v628_v27 = vpop.eup %627 }
 0x17a   :  { %v433_v28 = vsel %vm88_vm0, %v429_v24, 0.0  ;;  %v392_v30 = vadd.f32 %v628_v27, %v369_v26 }
 0x17b   :  { %v436_v23 = vsel %vm88_vm0, %v430_v21, 0.0  ;;  %v431_v29 = vmul.f32 %v428_v15, %v391_v25 }
 0x17c   :  { %437 = vadd.xlane.f32.xlu1 %v436_v23  ;;  %v432_v32 = vmul.f32 %v428_v15, %v392_v30 }
 0x17d   :  { %v439_v31 = vsel %vm88_vm0, %v431_v29, 0.0 }
 0x17e   :  { %v442_v33 = vsel %vm88_vm0, %v432_v32, 0.0 }
 0x180   :  { %434 = vadd.xlane.f32.xlu1 %v433_v28 }
 0x184   :  { %440 = vadd.xlane.f32.xlu1 %v439_v31 }
 0x188   :  { %443 = vadd.xlane.f32.xlu1 %v442_v33 }
 0x209   :  { %v438_v42 = vpop.xlane.xlu1 %437 }
 0x20a   :  { %v446_v53 = vmul.f32 %v438_v42, %v422_v49 }
 0x20c   :  { %v451_v57 = vsel %vm449_vm12, %v446_v53, 0.0 }
 0x20d   :  { %v435_v50 = vpop.xlane.xlu1 %434 }
 0x20e   :  { %v445_v51 = vmul.f32 %v435_v50, %v421_v46 }
 0x210   :  { %v450_v55 = vsel %vm449_vm12, %v445_v51, 0.0 }
 0x211   :  { %v441_v48 = vpop.xlane.xlu1 %440  ;;  %v452_v59 = vadd.f32 %v451_v57, %v450_v55 }
 0x212   :  { %v447_v45 = vmul.f32 %v441_v48, %v423_v52 }
 0x214   :  { %v453_v58 = vsel %vm449_vm12, %v447_v45, 0.0 }
 0x215   :  { %v444_v60 = vpop.xlane.xlu1 %443  ;;  %v454_v62 = vadd.f32 %v453_v58, %v452_v59 }
 0x216   :  { %v448_v61 = vmul.f32 %v444_v60, %v424_v56 }
 0x218   :  { %v455_v63 = vsel %vm449_vm12, %v448_v61, 0.0 }
 0x219   :  { %v456_v0 = vadd.f32 %v455_v63, %v454_v62 }
 0x21b   :  { %457 = vadd.xlane.f32.xlu1 %v456_v0 }
 0x2a8   :  { %v458_v1 = vpop.xlane.xlu1 %457 }
 0x2a9   :  { %v459_v2 = vrot.slane %v458_v1, 4 }
 0x2ab   :  { %v460_v4 = vadd.f32 %v459_v2, %v458_v1 }
 0x2ad   :  { %v461_v5 = vrot.slane %v460_v4, 2 }
 0x2af   :  { %v462_v7 = vadd.f32 %v461_v5, %v460_v4 }
 0x2b1   :  { %v463_v6 = vrot.slane %v462_v7, 1 }
 0x2b3   :  { %v464_v8 = vadd.f32 %v463_v6, %v462_v7 }
 0x2b5   :  { %570 = vpush %v464_v8 }
 0x2e6   :  { %s571_s2 = spop %570 }
 0x2e7   :  { %s469_s30 = smul.f32 %s571_s2, %s467_s29 }
 0x2e9   :  { %s479_s6 = smul.f32 0.015625, %s469_s30 }
 0x2eb   :  { %481 = sst [smem:[#allocation13]] %s479_s6 }
 0x2ec   :  { %698 = shalt.err (!%p695_p4)
}
 0x2ed   :  { %s713_s0 = smov [#allocation13]  }
 0x2ee   :  { %489 = dma.smem_to_hbm %s713_s0, 16, %s854_s5, [#allocation8]  }
 0x2ef   :  { %705 = dma.done.wait [#allocation8], 16  }
 0x2f0   :  { %706 = vsyncadd [#allocation8], 4294967280 }
 0x2f1   :  { %493 = sfence }
 0x2f2   :  { %494 = vsyncpa [#allocation7], 1 }
 0x2f3   :  { %495 = vsyncpa [#allocation12], 1 }
 0x2f4   :  { %496 = vsyncpa [#allocation8], 1 }
 0x2f5   :  { %497 = vsyncpa [#allocation9], 1 }

</bundles_post_ra>
